<compile_context>
chip_gen: v6e
topology: v6e:2x2x1
jax: 0.10.0
libtpu: 0.0.40
codegen_flags: <defaults>
</compile_context>

<pallas_src>
import math
import jax
import jax.numpy as jnp
from jax import lax
from jax.experimental import pallas as pl
from jax.experimental.pallas import tpu as pltpu


def _first_conv_kernel(x_ref, w_ref, b_ref, out_ref):
    # x_ref:   (B, M, 9C) bf16 im2col rows. Per image, rows [0, M/2) hold the patches
    #          of the even output columns, rows [M/2, M) the odd ones; within each
    #          half the row order is (h, wp), wp = pooled output column.
    # w_ref:   (9C, Fp) bf16 BN-folded conv weights, rows ordered (kh, kw, c).
    # b_ref:   (1, Fp)  f32 BN-folded conv bias.
    # out_ref: (B, HP, WP, Fp) f32 max-pooled output (pool kernel = stride = (3, 2)).
    B, M, K = x_ref.shape
    _, HP, WP, Fp = out_ref.shape
    half = M // 2

    # One MXU matmul for all images of this grid step (bf16 x bf16 -> f32 accumulate),
    # then bias + LeakyReLU(0.01) in f32.
    y = jnp.dot(x_ref[...].reshape(B * M, K), w_ref[...],
                preferred_element_type=jnp.float32)
    y = y + b_ref[...]
    y = jnp.maximum(y, 0.01 * y)                         # LeakyReLU(0.01)

    for bi in range(B):                                  # static unroll, B is small
        yb = y[bi * M:(bi + 1) * M, :]
        # MaxPool2d((3, 2)):
        #   W-pool: max of the even-output half and the odd-output half (aligned rows).
        #   H-pool: max of the three sublane-aligned WP-row groups of each pooled row.
        zw = jnp.maximum(yb[:half, :], yb[half:, :])     # (Ht*WP, Fp)
        zr = zw.reshape(HP, 3 * WP, Fp)
        out_ref[bi] = jnp.maximum(
            jnp.maximum(zr[:, :WP, :], zr[:, WP:2 * WP, :]),
            zr[:, 2 * WP:, :])                           # one contiguous lane-dense store


def _pick_batch_block(n):
    """Largest divisor of n that still leaves >= 2 grid steps (v7x has 2 TCs)."""
    if n < 2:
        return 1
    for bb in range(n // 2, 0, -1):
        if n % bb == 0:
            return bb
    return 1


def first_conv_layer(x_nchw, gamma, beta, w, b, *, eps=1e-5, f_pad=128):
    """x_nchw: (N, C, H, W) f32; w: (F, C, 3, 3); b: (F,); gamma/beta: (C,)."""
    N, C, H, W = x_nchw.shape
    F = w.shape[0]
    HP, WP = H // 3, W // 2                    # MaxPool2d((3,2)) truncates like PyTorch
    Ht, Wt = 3 * HP, 2 * WP
    Fp = max(f_pad, ((F + 127) // 128) * 128)  # lane-dense filter dim

    x = jnp.transpose(x_nchw, (0, 2, 3, 1)).astype(jnp.float32)          # NHWC

    # BatchNorm2d training-mode batch statistics (per channel, biased variance).
    mean = jnp.mean(x, axis=(0, 1, 2))
    var = jnp.var(x, axis=(0, 1, 2))
    inv = 1.0 / jnp.sqrt(var + eps)
    scale = (gamma * inv).astype(jnp.float32)                            # (C,)
    shift = (beta - mean * scale).astype(jnp.float32)                    # (C,)

    # Fold BN into the conv weights / bias. Weight rows ordered (kh, kw, c).
    w_taps = jnp.transpose(w, (2, 3, 1, 0)).reshape(9 * C, F).astype(jnp.float32)
    b_fold = b.astype(jnp.float32) + jnp.tile(shift, 9) @ w_taps         # (F,)  f32
    w_fold = w_taps * jnp.tile(scale, 9)[:, None]                        # (9C, F)
    w_pad = jnp.zeros((9 * C, Fp), jnp.bfloat16).at[:, :F].set(w_fold.astype(jnp.bfloat16))
    b_pad = jnp.zeros((1, Fp), jnp.float32).at[0, :F].set(b_fold)

    # 'same' zero padding of the *normalized* tensor == padding the raw tensor with the
    # value BN maps to 0: -shift/scale. (If scale==0 the folded weights are 0 and the
    # pad value is irrelevant; guard the division to avoid NaN/Inf.)
    safe_scale = jnp.where(scale == 0, 1.0, scale)
    pad_val = jnp.where(scale == 0, 0.0, -shift / safe_scale)            # (C,)
    xp = jnp.broadcast_to(pad_val, (N, H + 2, W + 2, C)).astype(jnp.float32)
    xp = xp.at[:, 1:H + 1, 1:W + 1, :].set(x)

    # im2col in the wrapper: lane-dense (kh, kw, c) contraction dim of width 9*C,
    # rows split as [even output columns | odd output columns] so the kernel's W-pool
    # is a max of the two aligned halves of the matmul result.
    patches = jnp.concatenate(
        [xp[:, kh:kh + Ht, kw:kw + W, :] for kh in range(3) for kw in range(3)],
        axis=-1)                                                         # (N, Ht, W, 9C)
    even = patches[:, :, 0:Wt:2, :].reshape(N, Ht * WP, 9 * C)
    odd = patches[:, :, 1:Wt:2, :].reshape(N, Ht * WP, 9 * C)
    xcol = jnp.concatenate([even, odd], axis=1).astype(jnp.bfloat16)     # (N, 2*Ht*WP, 9C)

    M = 2 * Ht * WP
    bb = _pick_batch_block(N)

    out_nhwc = pl.pallas_call(
        _first_conv_kernel,
        out_shape=jax.ShapeDtypeStruct((N, HP, WP, Fp), jnp.float32),
        grid_spec=pltpu.PrefetchScalarGridSpec(
            num_scalar_prefetch=0,
            grid=(N // bb,),
            in_specs=[
                pl.BlockSpec((bb, M, 9 * C), lambda i: (i, 0, 0)),
                pl.BlockSpec((9 * C, Fp), lambda i: (0, 0)),
                pl.BlockSpec((1, Fp), lambda i: (0, 0)),
            ],
            out_specs=pl.BlockSpec((bb, HP, WP, Fp), lambda i: (i, 0, 0, 0)),
        ),
        compiler_params=pltpu.CompilerParams(dimension_semantics=("parallel",)),
    )(xcol, w_pad, b_pad)

    # Dropout(p=0.5): identity (eval-mode semantics). Strip F padding, back to NCHW.
    return jnp.transpose(out_nhwc[..., :F], (0, 3, 1, 2))


def _reference(x, gamma, beta, w, b, eps=1e-5):
    # Pure-JAX reference of the module's forward (eval-mode dropout).
    mean = jnp.mean(x, axis=(0, 2, 3), keepdims=True)
    var = jnp.var(x, axis=(0, 2, 3), keepdims=True)
    y = gamma.reshape(1, -1, 1, 1) * (x - mean) / jnp.sqrt(var + eps) + beta.reshape(1, -1, 1, 1)
    conv = lax.conv_general_dilated(y, w, (1, 1), 'SAME',
                                    dimension_numbers=('NCHW', 'OIHW', 'NCHW'),
                                    precision=lax.Precision.HIGHEST)
    conv = conv + b.reshape(1, -1, 1, 1)
    act = jnp.where(conv > 0, conv, 0.01 * conv)
    H, W = x.shape[2], x.shape[3]
    act = act[:, :, :(H // 3) * 3, :(W // 2) * 2]
    return lax.reduce_window(act, -jnp.inf, lax.max, (1, 1, 3, 2), (1, 1, 3, 2), 'VALID')


if __name__ == "__main__":
    # Small shapes consistent with the module: input_tensor (=C) = 4, filters = 50.
    N, C, H, W, F = 2, 4, 18, 16, 50

    key = jax.random.PRNGKey(0)
    kx, kw = jax.random.split(key)

    x = jax.random.normal(kx, (N, C, H, W), dtype=jnp.float32)           # NCHW like PyTorch

    # BatchNorm params: weight=1, bias=0 (as in __init__).
    gamma = jnp.ones((C,), dtype=jnp.float32)
    beta = jnp.zeros((C,), dtype=jnp.float32)

    # Conv params: xavier_uniform_(gain=1) weight, zero bias.
    fan_in, fan_out = C * 3 * 3, F * 3 * 3
    bound = math.sqrt(6.0 / (fan_in + fan_out))
    w = jax.random.uniform(kw, (F, C, 3, 3), dtype=jnp.float32,
                           minval=-bound, maxval=bound)
    b = jnp.zeros((F,), dtype=jnp.float32)

    out = jax.jit(first_conv_layer)(x, gamma, beta, w, b)
    out = jax.block_until_ready(out)
    assert out.shape == (N, F, H // 3, W // 2)

    # Sanity check vs. a pure-JAX f32 reference (tolerance absorbs bf16 MXU operands).
    ref = _reference(x, gamma, beta, w, b)
    err = float(jnp.max(jnp.abs(out - ref)))
    assert err < 3e-2, f"max abs err {err}"

    print("KERNEL_OK")
</pallas_src>

<mosaic_0001>
module attributes {stable_mosaic.version = 11 : i64} {
  func.func @_first_conv_kernel(%arg0: i32, %arg1: memref<1x288x36xbf16, #tpu.memory_space<vmem>>, %arg2: memref<36x128xbf16, #tpu.memory_space<vmem>>, %arg3: memref<1x128xf32, #tpu.memory_space<vmem>>, %arg4: memref<1x6x8x128xf32, #tpu.memory_space<vmem>>) attributes {dimension_semantics = [#tpu.dimension_semantics<parallel>], iteration_bounds = array<i64: 2>, scalar_prefetch = 0 : i64, scratch_operands = 0 : i64, tpu.core_type = #tpu.core_type<tc>, window_params = [{transform_indices = @transform_0, window_bounds = array<i64: 1, 288, 36>}, {pipeline_mode = #tpu.pipeline_mode<synchronous>, transform_indices = @transform_1, window_bounds = array<i64: 36, 128>}, {pipeline_mode = #tpu.pipeline_mode<synchronous>, transform_indices = @transform_2, window_bounds = array<i64: 1, 128>}, {transform_indices = @transform_3, window_bounds = array<i64: 1, 6, 8, 128>}]} {
    %c0 = arith.constant 0 : index
    %c0_0 = arith.constant 0 : index
    %c0_1 = arith.constant 0 : index
    %0 = vector.load %arg1[%c0, %c0_0, %c0_1] : memref<1x288x36xbf16, #tpu.memory_space<vmem>>, vector<1x288x36xbf16>
    %1 = vector.shape_cast %0 : vector<1x288x36xbf16> to vector<288x36xbf16>
    %c0_2 = arith.constant 0 : index
    %c0_3 = arith.constant 0 : index
    %2 = vector.load %arg2[%c0_2, %c0_3] : memref<36x128xbf16, #tpu.memory_space<vmem>>, vector<36x128xbf16>
    %cst = arith.constant dense<0.000000e+00> : vector<288x128xf32>
    %3 = tpu.matmul %1, %2, %cst {dimension_numbers = #tpu.dot_dimension_numbers<[1], [0], [0], [1], [0, 0, 1, 1], [], []>} : vector<288x36xbf16>, vector<36x128xbf16>, vector<288x128xf32> -> vector<288x128xf32>
    %c0_4 = arith.constant 0 : index
    %c0_5 = arith.constant 0 : index
    %4 = vector.load %arg3[%c0_4, %c0_5] : memref<1x128xf32, #tpu.memory_space<vmem>>, vector<1x128xf32>
    %5 = vector.broadcast %4 : vector<1x128xf32> to vector<288x128xf32>
    %6 = arith.addf %3, %5 : vector<288x128xf32>
    %cst_6 = arith.constant 0.00999999977 : f32
    %7 = vector.broadcast %cst_6 : f32 to vector<288x128xf32>
    %8 = arith.mulf %7, %6 : vector<288x128xf32>
    %9 = arith.maximumf %6, %8 : vector<288x128xf32>
    %10 = vector.extract_strided_slice %9 {offsets = [0, 0], sizes = [144, 128], strides = [1, 1]} : vector<288x128xf32> to vector<144x128xf32>
    %11 = vector.extract_strided_slice %9 {offsets = [144, 0], sizes = [144, 128], strides = [1, 1]} : vector<288x128xf32> to vector<144x128xf32>
    %12 = arith.maximumf %10, %11 : vector<144x128xf32>
    %13 = vector.shape_cast %12 : vector<144x128xf32> to vector<6x24x128xf32>
    %14 = vector.extract_strided_slice %13 {offsets = [0, 0, 0], sizes = [6, 8, 128], strides = [1, 1, 1]} : vector<6x24x128xf32> to vector<6x8x128xf32>
    %15 = vector.extract_strided_slice %13 {offsets = [0, 8, 0], sizes = [6, 8, 128], strides = [1, 1, 1]} : vector<6x24x128xf32> to vector<6x8x128xf32>
    %16 = arith.maximumf %14, %15 : vector<6x8x128xf32>
    %17 = vector.extract_strided_slice %13 {offsets = [0, 16, 0], sizes = [6, 8, 128], strides = [1, 1, 1]} : vector<6x24x128xf32> to vector<6x8x128xf32>
    %18 = arith.maximumf %16, %17 : vector<6x8x128xf32>
    %c0_7 = arith.constant 0 : index
    %c0_8 = arith.constant 0 : index
    %c0_9 = arith.constant 0 : index
    %c0_10 = arith.constant 0 : index
    %19 = vector.load %arg4[%c0_7, %c0_8, %c0_9, %c0_10] : memref<1x6x8x128xf32, #tpu.memory_space<vmem>>, vector<1x6x8x128xf32>
    %20 = vector.shape_cast %19 : vector<1x6x8x128xf32> to vector<6x8x128xf32>
    %21 = vector.shape_cast %18 : vector<6x8x128xf32> to vector<1x6x8x128xf32>
    tpu.vector_store %arg4[%c0_7, %c0_8, %c0_9, %c0_10], %21 {strides = array<i32>} : memref<1x6x8x128xf32, #tpu.memory_space<vmem>>, vector<1x6x8x128xf32>,
    return
  }
  func.func @transform_0(%arg0: i32) -> (i32, i32, i32) {
    %c0_i32 = arith.constant 0 : i32
    %c0_i32_0 = arith.constant 0 : i32
    %c0_i32_1 = arith.constant 0 : i32
    return %arg0, %c0_i32, %c0_i32_0 : i32, i32, i32
  }
  func.func @transform_1(%arg0: i32) -> (i32, i32) {
    %c0_i32 = arith.constant 0 : i32
    %c0_i32_0 = arith.constant 0 : i32
    %c0_i32_1 = arith.constant 0 : i32
    return %c0_i32, %c0_i32_0 : i32, i32
  }
  func.func @transform_2(%arg0: i32) -> (i32, i32) {
    %c0_i32 = arith.constant 0 : i32
    %c0_i32_0 = arith.constant 0 : i32
    %c0_i32_1 = arith.constant 0 : i32
    return %c0_i32, %c0_i32_0 : i32, i32
  }
  func.func @transform_3(%arg0: i32) -> (i32, i32, i32, i32) {
    %c0_i32 = arith.constant 0 : i32
    %c0_i32_0 = arith.constant 0 : i32
    %c0_i32_1 = arith.constant 0 : i32
    %c0_i32_2 = arith.constant 0 : i32
    return %arg0, %c0_i32, %c0_i32_0, %c0_i32_1 : i32, i32, i32, i32
  }
}

</mosaic_0001>

<bundles_post_ra>
// kernel: tile.18
= control target key start
LH: loop header
LB: loop body
LE: loop exit
PB: predicated region body
PF: predicated region fallthrough
CT: control target
= control target key end

     0   :  { %s28_s0 = inlined_call_operand.vmem [shape: f32[4], index: 0, kind: input, shape index: {}]   ;;  %s29_s1 = inlined_call_operand.vmem [shape: f32[9,4], index: 1, kind: output, shape index: {}]  }
   0x1   :  { %v4_v0 = vld [vmem:[%s28_s0] ss:$0 sm:$0xff] }
   0x2   :  { %5 = vst [vmem:[%s29_s1] sm:$0xff] %v4_v0  ;;  %8 = vst [vmem:[%s29_s1 + $0x8] sm:$0xff] %v4_v0 }

// kernel: mul.9
= control target key start
LH: loop header
LB: loop body
LE: loop exit
PB: predicated region body
PF: predicated region fallthrough
CT: control target
= control target key end

     0   :  { %s77_s10 = smov 32   ;;  %s78_s11 = smov 24   ;;  %vm3_vm0 = vcmask 31744   ;;  %vm9_vm1 = vcmask 294144   ;;  %vm15_vm2 = vcmask 261344   ;;  %vm21_vm3 = vcmask 228544   ;;  %s125_s0 = inlined_call_operand.vmem [shape: f32[9,4], index: 0, kind: input, shape index: {}]   ;;  %s126_s1 = inlined_call_operand.vmem [shape: f32[36], index: 1, kind: output, shape index: {}]  }
   0x1   :  { %v61_v0 = vld [vmem:[%s125_s0 + $0x8] sm:$0x1]   ;;  %v63_v1 = vld [vmem:[%s125_s0 + $0x6] sm:$0x1]   ;;  %v62_v2 = vld [vmem:[%s125_s0 + $0x7] sm:$0x1]  }
   0x2   :  { %7 = vrot.lane.b32.xlu0 %v61_v0, %s77_s10  ;;  %19 = vrot.lane.b32.xlu1 %v63_v1, %s78_s11  ;;  %v64_v3 = vld [vmem:[%s125_s0 + $0x5] sm:$0x1]   ;;  %v2_v4 = vld [vmem:[%s125_s0] sm:$0x1]   ;;  %s79_s18 = smov 28   ;;  %s80_s19 = smov 20  }
   0x3   :  { %4 = vst.msk [vmem:[#allocation0] sm:$0x1] %vm3_vm0, %v2_v4   ;;  %v65_v5 = vld [vmem:[%s125_s0 + $0x4] sm:$0x1]   ;;  %v66_v6 = vld [vmem:[%s125_s0 + $0x3] sm:$0x1]  }
   0x4   :  { %s81_s24 = smov 16   ;;  %s82_s25 = smov 12   ;;  %v67_v7 = vld [vmem:[%s125_s0 + $0x2] sm:$0x1]   ;;  %v68_v8 = vld [vmem:[%s125_s0 + $0x1] sm:$0x1]  }
   0x5   :  { %s83_s0 = smov 8   ;;  %s84_s30 = smov 4   ;;  %vm27_vm4 = vcmask 195744   ;;  %vm33_vm5 = vcmask 162944   ;;  %vm39_vm6 = vcmask 130144   ;;  %vm45_vm7 = vcmask 97344  }
   0x6   :  { %13 = vrot.lane.b32.xlu0 %v62_v2, %s79_s18  ;;  %25 = vrot.lane.b32.xlu1 %v64_v3, %s80_s19  ;;  %vm51_vm8 = vcmask 64544  }
   0xa   :  { %31 = vrot.lane.b32.xlu0 %v65_v5, %s81_s24  ;;  %37 = vrot.lane.b32.xlu1 %v66_v6, %s82_s25 }
   0xe   :  { %43 = vrot.lane.b32.xlu0 %v67_v7, %s83_s0  ;;  %49 = vrot.lane.b32.xlu1 %v68_v8, %s84_s30 }
  0x74   :  { %v8_v9 = vpop.permute.xlu0 %7   ;;  %v20_v10 = vpop.permute.xlu1 %19  }
  0x75   :  { %10 = vst.msk [vmem:[#allocation0] sm:$0x1] %vm9_vm1, %v8_v9  }
  0x78   :  { %v14_v11 = vpop.permute.xlu0 %13   ;;  %v26_v12 = vpop.permute.xlu1 %25  }
  0x79   :  { %16 = vst.msk [vmem:[#allocation0] sm:$0x1] %vm15_vm2, %v14_v11  }
  0x7a   :  { %22 = vst.msk [vmem:[#allocation0] sm:$0x1] %vm21_vm3, %v20_v10  }
  0x7b   :  { %28 = vst.msk [vmem:[#allocation0] sm:$0x1] %vm27_vm4, %v26_v12  }
  0x7c   :  { %v32_v13 = vpop.permute.xlu0 %31   ;;  %v38_v14 = vpop.permute.xlu1 %37  }
  0x7d   :  { %34 = vst.msk [vmem:[#allocation0] sm:$0x1] %vm33_vm5, %v32_v13  }
  0x7e   :  { %40 = vst.msk [vmem:[#allocation0] sm:$0x1] %vm39_vm6, %v38_v14  }
  0x80   :  { %v44_v15 = vpop.permute.xlu0 %43   ;;  %v50_v16 = vpop.permute.xlu1 %49  }
  0x81   :  { %46 = vst.msk [vmem:[#allocation0] sm:$0x1] %vm45_vm7, %v44_v15  }
  0x82   :  { %52 = vst.msk [vmem:[#allocation0] sm:$0x1] %vm51_vm8, %v50_v16  }
  0x89   :  { %v57_v17 = vld [vmem:[#allocation0] sm:$0x1] }
  0x8a   :  { %60 = vst [vmem:[%s126_s1] sm:$0x1] %v57_v17 }

// kernel: first_conv_layer.1
= control target key start
LH: loop header
LB: loop body
LE: loop exit
PB: predicated region body
PF: predicated region fallthrough
CT: control target
= control target key end

     0   :  { %s903_s12 = smov 0   ;;  %s1055_s0 = inlined_call_operand.vmem [shape: bf16[2,288,36], index: 0, kind: input, shape index: {}]   ;;  %s1056_s1 = inlined_call_operand.vmem [shape: bf16[36,128], index: 1, kind: input, shape index: {}]   ;;  %s1057_s2 = inlined_call_operand.vmem [shape: f32[1,128], index: 2, kind: input, shape index: {}]   ;;  %s1058_s3 = inlined_call_operand.vmem [shape: f32[2,6,8,128], index: 3, kind: output, shape index: {}]  }
   0x1 LB: > { %s724_s13 = sadd.s32 4294967295, %s881_s12   ;;  %p728_p0 = scmp.ge.s32.totalorder %s881_s12, 1  ;;  %s881_s12 = sphi %s903_s12, %s13_s12  }
   0x2   : > { %p137_p1 = scmp.lt.s32.totalorder %s881_s12, 3 }
   0x4   : > { %p138_p2 = pnand %p728_p0, %p137_p1 }
   0x5   : > { %p161_p3 = scmp.lt.s32.totalorder (!%p138_p2), %s724_s13, 1 }
   0x6   : > { %141 = sbr.rel (%p138_p2) target bundleno = 266 (0x10a), region = 32 }
   0xb   : > { %v854_v0 = vld [vmem:[%s1056_s1 + $0x10] ss:$0 sps:$4 sm:$0x33]   ;;  %vm380_vm0 = vcmask 1041408   ;;  %v855_v1 = vld [vmem:[%s1056_s1 + $0x8] sm:$0xff]   ;;  %s1060_s13 = smov (!%p161_p3, %s724_s13), 1 }
   0xc   : > { %842 = vmatprep.subr.msk.bf16.mxu0 %vm380_vm0, %v854_v0  ;;  %843 = vmatprep.subr.msk.bf16.mxu1 %vm380_vm0, %v854_v0  ;;  %v382_v2 = vsel %vm380_vm0, %v854_v0, 0  ;;  %v856_v3 = vld [vmem:[%s1056_s1] sm:$0xff]   ;;  %s844_s20 = smul.u32 144, %s1060_s13  ;;  %vm325_vm1 = vcmask 293888  }
   0xd   : > { %795 = vmatpush3.bf16.msra.mxu0 %v382_v2  ;;  %839 = vmatpush3.bf16.msra.mxu1 %v382_v2  ;;  %v969_v28 = vld [vmem:[%s1057_s2] ss:$0 sm:$0xff]  ;;  %s845_s26 = smul.u32 48, %s1060_s13 }
   0xe   : > { %796 = vmatprep.subr.bf16.mxu0 %v855_v1  ;;  %837 = vmatprep.subr.bf16.mxu1 %v855_v1  ;;  %s926_s23 = scalar_lea.vmem %s1055_s0, %s844_s20 }
   0xf   : > { %v857_v4 = vld [vmem:[%s926_s23] sm:$0xff]   ;;  %v858_v5 = vld [vmem:[%s926_s23 + $0x50] sm:$0xff]   ;;  %v859_v6 = vld [vmem:[%s926_s23 + $0x8] sm:$0xff]   ;;  %s1008_s29 = scalar_lea.vmem %s1058_s3, %s845_s26 }
  0x10   : > { %800 = vmatprep.mubr.msk.bf16.mxu0 %vm325_vm1, %v857_v4  ;;  %v860_v7 = vld [vmem:[%s926_s23 + $0x58] sm:$0xff]   ;;  %820 = vmatprep.mubr.msk.bf16.mxu1 %vm325_vm1, %v858_v5  ;;  %v861_v8 = vld [vmem:[%s926_s23 + $0x10] sm:$0xff]   ;;  %v862_v9 = vld [vmem:[%s926_s23 + $0x60] sm:$0xff]  }
  0x11   : > { %797 = vmatpush3.bf16.msra.mxu0 %v855_v1  ;;  %840 = vmatpush3.bf16.msra.mxu1 %v855_v1  ;;  %v863_v10 = vld [vmem:[%s926_s23 + $0x18] sm:$0xff]   ;;  %v864_v11 = vld [vmem:[%s926_s23 + $0x68] sm:$0xff]   ;;  %v865_v12 = vld [vmem:[%s926_s23 + $0x20] sm:$0xff]  }
  0x12   : > { %798 = vmatprep.subr.bf16.mxu0 %v856_v3  ;;  %838 = vmatprep.subr.bf16.mxu1 %v856_v3  ;;  %v866_v13 = vld [vmem:[%s926_s23 + $0x70] sm:$0xff]   ;;  %v867_v14 = vld [vmem:[%s926_s23 + $0x28] sm:$0xff]   ;;  %v868_v15 = vld [vmem:[%s926_s23 + $0x78] sm:$0xff]  }
  0x13   : > { %v869_v16 = vld [vmem:[%s926_s23 + $0x30] sm:$0xff]   ;;  %v870_v17 = vld [vmem:[%s926_s23 + $0x80] sm:$0xff]   ;;  %v871_v18 = vld [vmem:[%s926_s23 + $0x38] sm:$0xff]  }
  0x14   : > { %v872_v19 = vld [vmem:[%s926_s23 + $0x88] sm:$0xff]   ;;  %v873_v20 = vld [vmem:[%s926_s23 + $0x40] sm:$0xff]  }
  0x15   : > { %799 = vmatpush3.bf16.msra.mxu0 %v856_v3  ;;  %841 = vmatpush3.bf16.msra.mxu1 %v856_v3  ;;  %v874_v21 = vld [vmem:[%s926_s23 + $0x48] sm:$0xff]  }
  0x18   : > { %801 = vmatmul.mubr.msk.bf16.vlgmr.msra.gmra.mxu0 %vm325_vm1, %v859_v6  ;;  %821 = vmatmul.mubr.msk.bf16.vlgmr.msra.gmra.mxu1 %vm325_vm1, %v860_v7 }
  0x19   : > { %804 = vmatprep.mubr.msk.bf16.mxu0 %vm325_vm1, %v861_v8  ;;  %824 = vmatprep.mubr.msk.bf16.mxu1 %vm325_vm1, %v862_v9 }
  0x20   : > { %805 = vmatmul.mubr.msk.bf16.gmra.mxu0 %vm325_vm1, %v863_v10  ;;  %825 = vmatmul.mubr.msk.bf16.gmra.mxu1 %vm325_vm1, %v864_v11 }
  0x21   : > { %808 = vmatprep.mubr.msk.bf16.mxu0 %vm325_vm1, %v865_v12  ;;  %828 = vmatprep.mubr.msk.bf16.mxu1 %vm325_vm1, %v866_v13 }
  0x28   : > { %809 = vmatmul.mubr.msk.bf16.gmra.mxu0 %vm325_vm1, %v867_v14  ;;  %829 = vmatmul.mubr.msk.bf16.gmra.mxu1 %vm325_vm1, %v868_v15 }
  0x29   : > { %812 = vmatprep.mubr.msk.bf16.mxu0 %vm325_vm1, %v869_v16  ;;  %832 = vmatprep.mubr.msk.bf16.mxu1 %vm325_vm1, %v870_v17 }
  0x30   : > { %813 = vmatmul.mubr.msk.bf16.gmra.mxu0 %vm325_vm1, %v871_v18  ;;  %833 = vmatmul.mubr.msk.bf16.gmra.mxu1 %vm325_vm1, %v872_v19 }
  0x31   : > { %816 = vmatprep.mubr.msk.bf16.mxu0 %vm325_vm1, %v873_v20 }
  0x38   : > { %817 = vmatmul.mubr.msk.bf16.gmra.mxu0 %vm325_vm1, %v874_v21 }
  0xd8   : > { %v802_v22 = vpop.f32.mrf.mxu0  ;;  %v822_v23 = vpop.f32.mrf.mxu1 }
  0xd9   : > { %v507_v29 = vadd.f32 %v822_v23, %v969_v28  ;;  %v981_v47 = vadd.f32 %v802_v22, %v969_v28 }
  0xda   : > { %v418_v24 = vpop.f32.mrf.mxu0  ;;  %v964_v25 = vpop.f32.mrf.mxu1 }
  0xdb   : > { %v583_v37 = vmul.f32 0.01, %v507_v29  ;;  %v988_v61 = vadd.f32 %v969_v28, %v418_v24 }
  0xdc   : > { %v803_v26 = vpop.f32.mrf.mxu0  ;;  %v823_v27 = vpop.f32.mrf.mxu1 }
  0xdd   : > { %v430_v33 = vadd.f32 %v803_v26, %v969_v28  ;;  %v510_v36 = vadd.f32 %v823_v27, %v969_v28  ;;  %v619_v51 = vmax.f32 %v507_v29, %v583_v37  ;;  %v999_v29 = vmul.f32 0.01, %v981_v47 }
  0xde   : > { %v972_v30 = vpop.f32.mrf.mxu0  ;;  %v501_v31 = vpop.f32.mrf.mxu1 }
  0xdf   : > { %v502_v32 = vadd.f32 %v969_v28, %v501_v31  ;;  %v564_v42 = vmul.f32 0.01, %v430_v33  ;;  %v584_v48 = vmul.f32 0.01, %v510_v36  ;;  %v1003_v31 = vadd.f32 %v969_v28, %v964_v25 }
  0xe0   : > { %v806_v34 = vpop.f32.mrf.mxu0  ;;  %v826_v35 = vpop.f32.mrf.mxu1 }
  0xe1   : > { %v582_v38 = vmul.f32 0.01, %v502_v32  ;;  %v443_v43 = vadd.f32 %v806_v34, %v969_v28  ;;  %v523_v53 = vadd.f32 %v826_v35, %v969_v28  ;;  %v600_v62 = vmax.f32 %v430_v33, %v564_v42 }
  0xe2   : > { %v434_v39 = vpop.f32.mrf.mxu0  ;;  %v514_v40 = vpop.f32.mrf.mxu1  ;;  %v620_v3 = vmax.f32 %v510_v36, %v584_v48 }
  0xe3   : > { %v435_v41 = vadd.f32 %v969_v28, %v434_v39  ;;  %v515_v44 = vadd.f32 %v969_v28, %v514_v40  ;;  %v618_v52 = vmax.f32 %v502_v32, %v582_v38  ;;  %v567_v63 = vmul.f32 0.01, %v443_v43 }
  0xe4   : > { %v807_v45 = vpop.f32.mrf.mxu0  ;;  %v827_v46 = vpop.f32.mrf.mxu1  ;;  %v587_v8 = vmul.f32 0.01, %v523_v53  ;;  %v1012_v40 = vmul.f32 0.01, %v988_v61 }
  0xe5   : > { %v565_v49 = vmul.f32 0.01, %v435_v41  ;;  %v446_v50 = vadd.f32 %v807_v45, %v969_v28  ;;  %v585_v54 = vmul.f32 0.01, %v515_v44  ;;  %v991_v0 = vadd.f32 %v827_v46, %v969_v28 }
  0xe6   : > { %v437_v55 = vpop.f32.mrf.mxu0  ;;  %v517_v56 = vpop.f32.mrf.mxu1  ;;  %v636_v7 = vmax.f32 %v600_v62, %v618_v52  ;;  %v603_v17 = vmax.f32 %v443_v43, %v567_v63  ;;  %v623_v36 = vmax.f32 %v523_v53, %v587_v8 }
  0xe7   : > { %v601_v57 = vmax.f32 %v435_v41, %v565_v49  ;;  %v568_v58 = vmul.f32 0.01, %v446_v50  ;;  %v438_v59 = vadd.f32 %v969_v28, %v437_v55  ;;  %v518_v60 = vadd.f32 %v969_v28, %v517_v56 }
  0xe8   : > { %v810_v1 = vpop.f32.mrf.mxu0  ;;  %v830_v2 = vpop.f32.mrf.mxu1  ;;  %v621_v9 = vmax.f32 %v515_v44, %v585_v54  ;;  %v588_v19 = vmul.f32 0.01, %v991_v0 }
  0xe9   : > { %v637_v4 = vmax.f32 %v601_v57, %v619_v51  ;;  %v566_v5 = vmul.f32 0.01, %v438_v59  ;;  %v586_v6 = vmul.f32 0.01, %v518_v60  ;;  %v459_v10 = vadd.f32 %v810_v1, %v969_v28 }
  0xea   : > { %v450_v11 = vpop.f32.mrf.mxu0  ;;  %v530_v12 = vpop.f32.mrf.mxu1  ;;  %v604_v13 = vmax.f32 %v446_v50, %v568_v58  ;;  %v639_v37 = vmax.f32 %v603_v17, %v621_v9  ;;  %v624_v25 = vmax.f32 %v991_v0, %v588_v19  ;;  %v539_v48 = vadd.f32 %v830_v2, %v969_v28 }
  0xeb   : > { %v602_v14 = vmax.f32 %v438_v59, %v566_v5  ;;  %v622_v15 = vmax.f32 %v518_v60, %v586_v6  ;;  %v451_v16 = vadd.f32 %v969_v28, %v450_v11  ;;  %v652_v18 = vmax.f32 %v636_v7, %v637_v4 }
  0xec   : > { %v531_v20 = vadd.f32 %v969_v28, %v530_v12  ;;  %v811_v21 = vpop.f32.mrf.mxu0  ;;  %v831_v22 = vpop.f32.mrf.mxu1  ;;  %v571_v26 = vmul.f32 0.01, %v459_v10  ;;  %v1029_v4 = vadd.f32 %v969_v28, %v972_v30  ;;  %v591_v5 = vmul.f32 0.01, %v539_v48 }
  0xed   : > { %v638_v23 = vmax.f32 %v602_v14, %v620_v3  ;;  %v640_v24 = vmax.f32 %v604_v13, %v622_v15  ;;  %v569_v27 = vmul.f32 0.01, %v451_v16  ;;  %v462_v33 = vadd.f32 %v811_v21, %v969_v28 }
  0xee   : > { %v589_v32 = vmul.f32 0.01, %v531_v20  ;;  %v453_v34 = vpop.f32.mrf.mxu0  ;;  %v533_v35 = vpop.f32.mrf.mxu1  ;;  %v607_v46 = vmax.f32 %v459_v10, %v571_v26  ;;  %v542_v57 = vadd.f32 %v831_v22, %v969_v28  ;;  %v1025_v3 = vmul.f32 0.01, %v1003_v31 }
  0xef   : > { %v658_v38 = vmax.f32 %v652_v18, %v638_v23  ;;  %v605_v39 = vmax.f32 %v451_v16, %v569_v27  ;;  %v454_v41 = vadd.f32 %v969_v28, %v453_v34  ;;  %v534_v42 = vadd.f32 %v969_v28, %v533_v35 }
  0xf0   : > { %v814_v43 = vpop.f32.mrf.mxu0  ;;  %v834_v44 = vpop.f32.mrf.mxu1  ;;  %v653_v45 = vmax.f32 %v639_v37, %v640_v24  ;;  %v625_v50 = vmax.f32 %v531_v20, %v589_v32  ;;  %v572_v51 = vmul.f32 0.01, %v462_v33  ;;  %v592_v13 = vmul.f32 0.01, %v542_v57 }
  0xf1   : > { %664 = vst [vmem:[%s1008_s29 + $0x8] sm:$0xff] %v658_v38  ;;  %v641_v49 = vmax.f32 %v605_v39, %v623_v36  ;;  %v570_v52 = vmul.f32 0.01, %v454_v41  ;;  %v590_v53 = vmul.f32 0.01, %v534_v42  ;;  %v475_v58 = vadd.f32 %v814_v43, %v969_v28 }
  0xf2   : > { %v466_v54 = vpop.f32.mrf.mxu0  ;;  %v546_v55 = vpop.f32.mrf.mxu1  ;;  %v555_v63 = vadd.f32 %v834_v44, %v969_v28  ;;  %v643_v7 = vmax.f32 %v607_v46, %v625_v50  ;;  %v608_v8 = vmax.f32 %v462_v33, %v572_v51  ;;  %v562_v21 = vmul.f32 0.01, %v1029_v4 }
  0xf3   : > { %v659_v56 = vmax.f32 %v653_v45, %v641_v49  ;;  %v467_v59 = vadd.f32 %v969_v28, %v466_v54  ;;  %v606_v60 = vmax.f32 %v454_v41, %v570_v52  ;;  %v626_v62 = vmax.f32 %v534_v42, %v590_v53 }
  0xf4   : > { %v547_v0 = vadd.f32 %v969_v28, %v546_v55  ;;  %v815_v1 = vpop.f32.mrf.mxu0  ;;  %v835_v2 = vpop.f32.mrf.mxu1  ;;  %v575_v14 = vmul.f32 0.01, %v475_v58  ;;  %v595_v19 = vmul.f32 0.01, %v555_v63  ;;  %v627_v35 = vmax.f32 %v539_v48, %v591_v5 }
  0xf5   : > { %665 = vst [vmem:[%s1008_s29 + $0x10] sm:$0xff] %v659_v56  ;;  %v573_v6 = vmul.f32 0.01, %v467_v59  ;;  %v642_v9 = vmax.f32 %v606_v60, %v624_v25  ;;  %v644_v18 = vmax.f32 %v608_v8, %v626_v62  ;;  %v478_v30 = vadd.f32 %v815_v1, %v969_v28 }
  0xf6   : > { %v593_v10 = vmul.f32 0.01, %v547_v0  ;;  %v469_v11 = vpop.f32.mrf.mxu0  ;;  %v549_v12 = vpop.f32.mrf.mxu1  ;;  %v558_v23 = vadd.f32 %v835_v2, %v969_v28  ;;  %v628_v36 = vmax.f32 %v542_v57, %v592_v13  ;;  %v611_v39 = vmax.f32 %v475_v58, %v575_v14 }
  0xf7   : > { %v470_v15 = vadd.f32 %v969_v28, %v469_v11  ;;  %v550_v16 = vadd.f32 %v969_v28, %v549_v12  ;;  %v654_v17 = vmax.f32 %v642_v9, %v643_v7  ;;  %v609_v22 = vmax.f32 %v467_v59, %v573_v6 }
  0xf8   : > { %v818_v20 = vpop.f32.mrf.mxu0  ;;  %v629_v27 = vmax.f32 %v547_v0, %v593_v10  ;;  %v631_v25 = vmax.f32 %v555_v63, %v595_v19  ;;  %v576_v41 = vmul.f32 0.01, %v478_v30  ;;  %v596_v51 = vmul.f32 0.01, %v558_v23 }
  0xf9   : > { %v574_v24 = vmul.f32 0.01, %v470_v15  ;;  %v660_v26 = vmax.f32 %v654_v17, %v644_v18  ;;  %v594_v32 = vmul.f32 0.01, %v550_v16  ;;  %v491_v33 = vadd.f32 %v818_v20, %v969_v28 }
  0xfa   : > { %v482_v34 = vpop.f32.mrf.mxu0  ;;  %v645_v44 = vmax.f32 %v609_v22, %v627_v35  ;;  %v647_v50 = vmax.f32 %v611_v39, %v629_v27  ;;  %v597_v58 = vmax.f32 %v988_v61, %v1012_v40  ;;  %v617_v59 = vmax.f32 %v1003_v31, %v1025_v3 }
  0xfb   : > { %v610_v37 = vmax.f32 %v470_v15, %v574_v24  ;;  %v483_v38 = vadd.f32 %v969_v28, %v482_v34  ;;  %666 = vst [vmem:[%s1008_s29 + $0x18] sm:$0xff] %v660_v26  ;;  %v579_v42 = vmul.f32 0.01, %v491_v33  ;;  %v630_v52 = vmax.f32 %v550_v16, %v594_v32 }
  0xfc   : > { %v819_v43 = vpop.f32.mrf.mxu0  ;;  %v598_v60 = vmax.f32 %v1029_v4, %v562_v21  ;;  %v612_v62 = vmax.f32 %v478_v30, %v576_v41  ;;  %v599_v5 = vmax.f32 %v981_v47, %v999_v29  ;;  %v632_v6 = vmax.f32 %v558_v23, %v596_v51 }
  0xfd   : > { %v646_v45 = vmax.f32 %v610_v37, %v628_v36  ;;  %v577_v46 = vmul.f32 0.01, %v483_v38  ;;  %v494_v49 = vadd.f32 %v819_v43, %v969_v28  ;;  %v615_v53 = vmax.f32 %v491_v33, %v579_v42 }
  0xfe   : > { %v485_v48 = vpop.f32.mrf.mxu0  ;;  %v635_v8 = vmax.f32 %v599_v5, %v617_v59 }
  0xff   : > { %v655_v54 = vmax.f32 %v645_v44, %v646_v45  ;;  %v613_v55 = vmax.f32 %v483_v38, %v577_v46  ;;  %v580_v56 = vmul.f32 0.01, %v494_v49  ;;  %v486_v57 = vadd.f32 %v969_v28, %v485_v48 }
 0x100   : > { %v648_v28 = vmax.f32 %v612_v62, %v630_v52  ;;  %v633_v7 = vmax.f32 %v597_v58, %v615_v53 }
 0x101   : > { %v661_v63 = vmax.f32 %v655_v54, %v647_v50  ;;  %v649_v0 = vmax.f32 %v613_v55, %v631_v25  ;;  %v616_v1 = vmax.f32 %v494_v49, %v580_v56  ;;  %v578_v2 = vmul.f32 0.01, %v486_v57 }
 0x103   : > { %667 = vst [vmem:[%s1008_s29 + $0x20] sm:$0xff] %v661_v63  ;;  %v634_v61 = vmax.f32 %v598_v60, %v616_v1  ;;  %v614_v40 = vmax.f32 %v486_v57, %v578_v2  ;;  %v656_v31 = vmax.f32 %v648_v28, %v649_v0 }
 0x105   : > { %v651_v3 = vmax.f32 %v633_v7, %v634_v61  ;;  %v650_v4 = vmax.f32 %v614_v40, %v632_v6 }
 0x107   : > { %v657_v9 = vmax.f32 %v651_v3, %v635_v8  ;;  %v662_v10 = vmax.f32 %v656_v31, %v650_v4 }
 0x109   : > { %663 = vst [vmem:[%s1008_s29] sm:$0xff] %v657_v9  ;;  %668 = vst [vmem:[%s1008_s29 + $0x28] sm:$0xff] %v662_v10 }
 0x10a PF: > { %s13_s12 = sadd.s32 1, %s881_s12  }
 0x10b   : > { %p10_p4 = scmp.ge.s32.totalorder %s13_s12, 4  }
 0x10d   :  { %12 = sbr.rel (!%p10_p4) target bundleno = 1 (0x1), region = 62 }

</bundles_post_ra>
